<compile_context>
chip_gen: v5e
topology: v5e:2x2
jax: 0.10.0
libtpu: 0.0.40
codegen_flags: <defaults>
</compile_context>

<pallas_src>
import functools

import jax
import jax.numpy as jnp
from jax import lax
from jax.experimental import pallas as pl
from jax.experimental.pallas import tpu as pltpu

BN_EPS = 1e-5
LANE = 128


def _round_up(x, m):
    return ((x + m - 1) // m) * m


def _full_spec(shape):
    # Whole-array block, resident in VMEM (no grid).
    return pl.BlockSpec(shape, lambda: tuple(0 for _ in shape), memory_space=pltpu.VMEM)


def _make_fused_mlp_kernel(num_layers):
    """Builds the fused kernel for a fixed (static) number of layers."""
    num_bn = num_layers - 1

    def kernel(*refs):
        # ref layout: x, w_0 .. w_{L-1}, b_last, [bn_all], out
        x_ref = refs[0]
        w_refs = refs[1:1 + num_layers]
        b_last_ref = refs[1 + num_layers]
        if num_bn > 0:
            bn_ref = refs[2 + num_layers]
            o_ref = refs[3 + num_layers]
            bn_params = bn_ref[...]               # (num_bn, 2, H_pad), f32
        else:
            o_ref = refs[2 + num_layers]

        h = x_ref[...]                            # bf16 activations, (N, D_in_pad)
        for layer in range(num_bn):
            # Linear. Bias is folded out: bias before training-mode BN cancels exactly.
            z = jnp.dot(h, w_refs[layer][...], preferred_element_type=jnp.float32)
            # BatchNorm1d (training mode: batch mean, biased batch variance).
            mean = jnp.mean(z, axis=0, keepdims=True)
            var = jnp.mean(jnp.square(z - mean), axis=0, keepdims=True)
            gamma = bn_params[layer, 0:1, :]      # (1, H_pad)
            beta = bn_params[layer, 1:2, :]       # (1, H_pad)
            scale = gamma * lax.rsqrt(var + BN_EPS)
            shift = beta - mean * scale
            y = jnp.maximum(z * scale + shift, 0.0)   # folded affine + ReLU, f32
            h = y.astype(jnp.bfloat16)            # bf16 for the next MXU matmul
        # Final linear keeps its bias.
        z = jnp.dot(h, w_refs[num_layers - 1][...], preferred_element_type=jnp.float32)
        o_ref[...] = (z + b_last_ref[...]).astype(o_ref.dtype)

    return kernel


@functools.partial(jax.jit, static_argnames=("num_layers",))
def mlp_forward(x, params, num_layers):
    n, input_dim = x.shape
    w_list = [w for (w, _) in params["linears"]]
    b_last = params["linears"][-1][1]
    output_dim = w_list[-1].shape[1]
    num_bn = num_layers - 1

    # ---- Lane-dense padding: every feature dim -> multiple of 128, weights cast to bf16.
    padded_w = []
    for w in w_list:
        d_in, d_out = w.shape
        wp = jnp.zeros((_round_up(d_in, LANE), _round_up(d_out, LANE)), jnp.float32)
        wp = wp.at[:d_in, :d_out].set(w)
        padded_w.append(wp.astype(jnp.bfloat16))

    in_pad = padded_w[0].shape[0]
    out_pad = padded_w[-1].shape[1]

    xp = jnp.zeros((n, in_pad), jnp.float32).at[:, :input_dim].set(x).astype(jnp.bfloat16)
    b_pad = jnp.zeros((1, out_pad), jnp.float32).at[0, :output_dim].set(b_last)

    inputs = [xp] + padded_w + [b_pad]

    if num_bn > 0:
        hid_pad = padded_w[0].shape[1]
        gammas = jnp.stack([
            jnp.ones((hid_pad,), jnp.float32)
            .at[: params["bn_gamma"][i].shape[0]].set(params["bn_gamma"][i])
            for i in range(num_bn)
        ])
        betas = jnp.stack([
            jnp.zeros((hid_pad,), jnp.float32)
            .at[: params["bn_beta"][i].shape[0]].set(params["bn_beta"][i])
            for i in range(num_bn)
        ])
        bn_all = jnp.stack([gammas, betas], axis=1)   # (num_bn, 2, hid_pad)
        inputs.append(bn_all)

    # ---- Advisory cost estimate for the XLA scheduler.
    flops = sum(2 * n * wp.shape[0] * wp.shape[1] for wp in padded_w)
    transcendentals = (num_bn * padded_w[0].shape[1]) if num_bn > 0 else 0
    bytes_accessed = sum(int(a.size) * a.dtype.itemsize for a in inputs) + n * out_pad * 4

    out_full = pl.pallas_call(
        _make_fused_mlp_kernel(num_layers),
        out_shape=jax.ShapeDtypeStruct((n, out_pad), jnp.float32),
        in_specs=[_full_spec(a.shape) for a in inputs],
        out_specs=_full_spec((n, out_pad)),
        compiler_params=pltpu.CompilerParams(vmem_limit_bytes=32 * 1024 * 1024),
        cost_estimate=pl.CostEstimate(
            flops=flops, transcendentals=transcendentals, bytes_accessed=bytes_accessed),
    )(*inputs)

    return out_full[:, :output_dim]


def init_mlp_params(key, num_layers, input_dim, hidden_dim, output_dim):
    """Deterministic parameter init (PyTorch-style uniform ranges, synthetic)."""
    if num_layers < 1:
        raise ValueError("number of layers should be positive!")

    def linear_init(k, d_in, d_out):
        k_w, k_b = jax.random.split(k)
        bound = 1.0 / jnp.sqrt(d_in)
        # stored pre-transposed: (d_in, d_out) so the kernel does x @ W
        w_t = jax.random.uniform(k_w, (d_in, d_out), jnp.float32, -bound, bound)
        b = jax.random.uniform(k_b, (d_out,), jnp.float32, -bound, bound)
        return w_t, b

    params = {"linears": [], "bn_gamma": [], "bn_beta": []}
    if num_layers == 1:
        k = jax.random.fold_in(key, 0)
        params["linears"].append(linear_init(k, input_dim, output_dim))
        return params

    dims = [input_dim] + [hidden_dim] * (num_layers - 1) + [output_dim]
    for i in range(num_layers):
        k = jax.random.fold_in(key, i)
        params["linears"].append(linear_init(k, dims[i], dims[i + 1]))
    for _ in range(num_layers - 1):
        params["bn_gamma"].append(jnp.ones((hidden_dim,), jnp.float32))
        params["bn_beta"].append(jnp.zeros((hidden_dim,), jnp.float32))
    return params


def _reference_forward_f32(x, params, num_layers):
    """Pure-f32 JAX reference (module semantics)."""
    if num_layers == 1:
        w_t, b = params["linears"][0]
        return x @ w_t + b
    h = x
    for layer in range(num_layers - 1):
        w_t, b = params["linears"][layer]
        z = h @ w_t + b
        mean = jnp.mean(z, axis=0, keepdims=True)
        var = jnp.mean((z - mean) ** 2, axis=0, keepdims=True)
        z = (z - mean) * lax.rsqrt(var + BN_EPS)
        z = z * params["bn_gamma"][layer] + params["bn_beta"][layer]
        h = jnp.maximum(z, 0.0)
    w_t, b = params["linears"][num_layers - 1]
    return h @ w_t + b


def _reference_forward_bf16(x, params, num_layers):
    """Reference that mirrors the kernel's precision: bf16 matmul inputs, f32 accumulate/BN."""
    def mm(a, w):
        return jnp.dot(a.astype(jnp.bfloat16), w.astype(jnp.bfloat16),
                       preferred_element_type=jnp.float32)

    if num_layers == 1:
        w_t, b = params["linears"][0]
        return mm(x, w_t) + b
    h = x
    for layer in range(num_layers - 1):
        w_t, b = params["linears"][layer]
        z = mm(h, w_t) + b
        mean = jnp.mean(z, axis=0, keepdims=True)
        var = jnp.mean((z - mean) ** 2, axis=0, keepdims=True)
        z = (z - mean) * lax.rsqrt(var + BN_EPS)
        z = z * params["bn_gamma"][layer] + params["bn_beta"][layer]
        h = jnp.maximum(z, 0.0)
    w_t, b = params["linears"][num_layers - 1]
    return mm(h, w_t) + b


if __name__ == "__main__":
    num_layers, input_dim, hidden_dim, output_dim = 3, 16, 32, 8
    batch = 8

    key = jax.random.PRNGKey(0)
    k_x, k_p = jax.random.split(key)
    x = jax.random.normal(k_x, (batch, input_dim), jnp.float32)
    params = init_mlp_params(k_p, num_layers, input_dim, hidden_dim, output_dim)

    out = mlp_forward(x, params, num_layers)
    out = jax.block_until_ready(out)
    assert out.shape == (batch, output_dim)

    # Tight check: same bf16-matmul / f32-accumulate precision as the kernel.
    ref_bf16 = _reference_forward_bf16(x, params, num_layers)
    assert jnp.allclose(out, ref_bf16, atol=2e-3, rtol=2e-3), "mismatch vs bf16 reference"

    # Loose sanity check against the full-f32 module semantics (bf16 MXU inputs give
    # ~1e-2-scale deviations, as expected).
    ref_f32 = _reference_forward_f32(x, params, num_layers)
    assert jnp.allclose(out, ref_f32, atol=1e-1, rtol=1e-1), "mismatch vs f32 reference"

    print("KERNEL_OK")
</pallas_src>

<mosaic_0001>
module attributes {stable_mosaic.version = 11 : i64} {
  func.func @kernel(%arg0: memref<8x128xbf16, #tpu.memory_space<vmem>>, %arg1: memref<128x128xbf16, #tpu.memory_space<vmem>>, %arg2: memref<128x128xbf16, #tpu.memory_space<vmem>>, %arg3: memref<128x128xbf16, #tpu.memory_space<vmem>>, %arg4: memref<1x128xf32, #tpu.memory_space<vmem>>, %arg5: memref<2x2x128xf32, #tpu.memory_space<vmem>>, %arg6: memref<8x128xf32, #tpu.memory_space<vmem>>) attributes {dimension_semantics = [], scalar_prefetch = 0 : i64, scratch_operands = 0 : i64, tpu.core_type = #tpu.core_type<tc>} {
    %c0 = arith.constant 0 : index
    %c0_0 = arith.constant 0 : index
    %c0_1 = arith.constant 0 : index
    %0 = vector.load %arg5[%c0, %c0_0, %c0_1] : memref<2x2x128xf32, #tpu.memory_space<vmem>>, vector<2x2x128xf32>
    %c0_2 = arith.constant 0 : index
    %c0_3 = arith.constant 0 : index
    %1 = vector.load %arg0[%c0_2, %c0_3] : memref<8x128xbf16, #tpu.memory_space<vmem>>, vector<8x128xbf16>
    %c0_4 = arith.constant 0 : index
    %c0_5 = arith.constant 0 : index
    %2 = vector.load %arg1[%c0_4, %c0_5] : memref<128x128xbf16, #tpu.memory_space<vmem>>, vector<128x128xbf16>
    %cst = arith.constant dense<0.000000e+00> : vector<8x128xf32>
    %3 = tpu.matmul %1, %2, %cst {dimension_numbers = #tpu.dot_dimension_numbers<[1], [0], [0], [1], [0, 0, 1, 1], [], []>} : vector<8x128xbf16>, vector<128x128xbf16>, vector<8x128xf32> -> vector<8x128xf32>
    %cst_6 = arith.constant dense<0.000000e+00> : vector<128xf32>
    %4 = vector.multi_reduction <add>, %3, %cst_6 [0] : vector<8x128xf32> to vector<128xf32>
    %5 = vector.shape_cast %4 : vector<128xf32> to vector<1x128xf32>
    %cst_7 = arith.constant 8.000000e+00 : f32
    %6 = vector.broadcast %cst_7 : f32 to vector<1x128xf32>
    %7 = arith.divf %5, %6 : vector<1x128xf32>
    %8 = vector.broadcast %7 : vector<1x128xf32> to vector<8x128xf32>
    %9 = arith.subf %3, %8 : vector<8x128xf32>
    %10 = arith.mulf %9, %9 : vector<8x128xf32>
    %cst_8 = arith.constant dense<0.000000e+00> : vector<128xf32>
    %11 = vector.multi_reduction <add>, %10, %cst_8 [0] : vector<8x128xf32> to vector<128xf32>
    %12 = vector.shape_cast %11 : vector<128xf32> to vector<1x128xf32>
    %cst_9 = arith.constant 8.000000e+00 : f32
    %13 = vector.broadcast %cst_9 : f32 to vector<1x128xf32>
    %14 = arith.divf %12, %13 : vector<1x128xf32>
    %15 = vector.extract_strided_slice %0 {offsets = [0, 0, 0], sizes = [1, 1, 128], strides = [1, 1, 1]} : vector<2x2x128xf32> to vector<1x1x128xf32>
    %16 = vector.shape_cast %15 : vector<1x1x128xf32> to vector<1x128xf32>
    %17 = vector.extract_strided_slice %0 {offsets = [0, 1, 0], sizes = [1, 1, 128], strides = [1, 1, 1]} : vector<2x2x128xf32> to vector<1x1x128xf32>
    %18 = vector.shape_cast %17 : vector<1x1x128xf32> to vector<1x128xf32>
    %cst_10 = arith.constant 9.99999974E-6 : f32
    %19 = vector.broadcast %cst_10 : f32 to vector<1x128xf32>
    %20 = arith.addf %14, %19 : vector<1x128xf32>
    %21 = math.rsqrt %20 : vector<1x128xf32>
    %22 = arith.mulf %16, %21 : vector<1x128xf32>
    %23 = arith.mulf %7, %22 : vector<1x128xf32>
    %24 = arith.subf %18, %23 : vector<1x128xf32>
    %25 = vector.broadcast %22 : vector<1x128xf32> to vector<8x128xf32>
    %26 = arith.mulf %3, %25 : vector<8x128xf32>
    %27 = vector.broadcast %24 : vector<1x128xf32> to vector<8x128xf32>
    %28 = arith.addf %26, %27 : vector<8x128xf32>
    %cst_11 = arith.constant 0.000000e+00 : f32
    %29 = vector.broadcast %cst_11 : f32 to vector<8x128xf32>
    %30 = arith.maximumf %28, %29 : vector<8x128xf32>
    %31 = arith.truncf %30 : vector<8x128xf32> to vector<8x128xbf16>
    %c0_12 = arith.constant 0 : index
    %c0_13 = arith.constant 0 : index
    %32 = vector.load %arg2[%c0_12, %c0_13] : memref<128x128xbf16, #tpu.memory_space<vmem>>, vector<128x128xbf16>
    %cst_14 = arith.constant dense<0.000000e+00> : vector<8x128xf32>
    %33 = tpu.matmul %31, %32, %cst_14 {dimension_numbers = #tpu.dot_dimension_numbers<[1], [0], [0], [1], [0, 0, 1, 1], [], []>} : vector<8x128xbf16>, vector<128x128xbf16>, vector<8x128xf32> -> vector<8x128xf32>
    %cst_15 = arith.constant dense<0.000000e+00> : vector<128xf32>
    %34 = vector.multi_reduction <add>, %33, %cst_15 [0] : vector<8x128xf32> to vector<128xf32>
    %35 = vector.shape_cast %34 : vector<128xf32> to vector<1x128xf32>
    %cst_16 = arith.constant 8.000000e+00 : f32
    %36 = vector.broadcast %cst_16 : f32 to vector<1x128xf32>
    %37 = arith.divf %35, %36 : vector<1x128xf32>
    %38 = vector.broadcast %37 : vector<1x128xf32> to vector<8x128xf32>
    %39 = arith.subf %33, %38 : vector<8x128xf32>
    %40 = arith.mulf %39, %39 : vector<8x128xf32>
    %cst_17 = arith.constant dense<0.000000e+00> : vector<128xf32>
    %41 = vector.multi_reduction <add>, %40, %cst_17 [0] : vector<8x128xf32> to vector<128xf32>
    %42 = vector.shape_cast %41 : vector<128xf32> to vector<1x128xf32>
    %cst_18 = arith.constant 8.000000e+00 : f32
    %43 = vector.broadcast %cst_18 : f32 to vector<1x128xf32>
    %44 = arith.divf %42, %43 : vector<1x128xf32>
    %45 = vector.extract_strided_slice %0 {offsets = [1, 0, 0], sizes = [1, 1, 128], strides = [1, 1, 1]} : vector<2x2x128xf32> to vector<1x1x128xf32>
    %46 = vector.shape_cast %45 : vector<1x1x128xf32> to vector<1x128xf32>
    %47 = vector.extract_strided_slice %0 {offsets = [1, 1, 0], sizes = [1, 1, 128], strides = [1, 1, 1]} : vector<2x2x128xf32> to vector<1x1x128xf32>
    %48 = vector.shape_cast %47 : vector<1x1x128xf32> to vector<1x128xf32>
    %cst_19 = arith.constant 9.99999974E-6 : f32
    %49 = vector.broadcast %cst_19 : f32 to vector<1x128xf32>
    %50 = arith.addf %44, %49 : vector<1x128xf32>
    %51 = math.rsqrt %50 : vector<1x128xf32>
    %52 = arith.mulf %46, %51 : vector<1x128xf32>
    %53 = arith.mulf %37, %52 : vector<1x128xf32>
    %54 = arith.subf %48, %53 : vector<1x128xf32>
    %55 = vector.broadcast %52 : vector<1x128xf32> to vector<8x128xf32>
    %56 = arith.mulf %33, %55 : vector<8x128xf32>
    %57 = vector.broadcast %54 : vector<1x128xf32> to vector<8x128xf32>
    %58 = arith.addf %56, %57 : vector<8x128xf32>
    %cst_20 = arith.constant 0.000000e+00 : f32
    %59 = vector.broadcast %cst_20 : f32 to vector<8x128xf32>
    %60 = arith.maximumf %58, %59 : vector<8x128xf32>
    %61 = arith.truncf %60 : vector<8x128xf32> to vector<8x128xbf16>
    %c0_21 = arith.constant 0 : index
    %c0_22 = arith.constant 0 : index
    %62 = vector.load %arg3[%c0_21, %c0_22] : memref<128x128xbf16, #tpu.memory_space<vmem>>, vector<128x128xbf16>
    %cst_23 = arith.constant dense<0.000000e+00> : vector<8x128xf32>
    %63 = tpu.matmul %61, %62, %cst_23 {dimension_numbers = #tpu.dot_dimension_numbers<[1], [0], [0], [1], [0, 0, 1, 1], [], []>} : vector<8x128xbf16>, vector<128x128xbf16>, vector<8x128xf32> -> vector<8x128xf32>
    %c0_24 = arith.constant 0 : index
    %c0_25 = arith.constant 0 : index
    %64 = vector.load %arg4[%c0_24, %c0_25] : memref<1x128xf32, #tpu.memory_space<vmem>>, vector<1x128xf32>
    %65 = vector.broadcast %64 : vector<1x128xf32> to vector<8x128xf32>
    %66 = arith.addf %63, %65 : vector<8x128xf32>
    %c0_26 = arith.constant 0 : index
    %c0_27 = arith.constant 0 : index
    %67 = vector.load %arg6[%c0_26, %c0_27] : memref<8x128xf32, #tpu.memory_space<vmem>>, vector<8x128xf32>
    tpu.vector_store %arg6[%c0_26, %c0_27], %66 {strides = array<i32>} : memref<8x128xf32, #tpu.memory_space<vmem>>, vector<8x128xf32>,
    return
  }
}

</mosaic_0001>

<bundles_post_ra>
// kernel: mlp_forward.1
= control target key start
LH: loop header
LB: loop body
LE: loop exit
PB: predicated region body
PF: predicated region fallthrough
CT: control target
= control target key end

     0   :  { %s649_s0 = inlined_call_operand.vmem [shape: bf16[8,128], index: 0, kind: input, shape index: {}]   ;;  %s650_s1 = inlined_call_operand.vmem [shape: bf16[128,128], index: 1, kind: input, shape index: {}]   ;;  %s651_s2 = inlined_call_operand.vmem [shape: bf16[128,128], index: 2, kind: input, shape index: {}]   ;;  %s652_s3 = inlined_call_operand.vmem [shape: bf16[128,128], index: 3, kind: input, shape index: {}]   ;;  %s653_s4 = inlined_call_operand.vmem [shape: f32[1,128], index: 4, kind: input, shape index: {}]   ;;  %s654_s5 = inlined_call_operand.vmem [shape: f32[2,2,128], index: 5, kind: input, shape index: {}]   ;;  %s655_s6 = inlined_call_operand.hbm [shape: f32[8,128], index: 6, kind: output, shape index: {}]  }
   0x1   :  { %v467_v0 = vld [vmem:[%s650_s1 + $0x38] sm:$0xff]  ;;  %v466_v1 = vld [vmem:[%s650_s1 + $0x30] sm:$0xff] }
   0x2   :  { %91 = vmatpush.bf16.msra.mxu0 %v467_v0 }
   0x3   :  { %11 = vsyncpa [#allocation3], 0  ;;  %v465_v2 = vld [vmem:[%s650_s1 + $0x28] sm:$0xff]  ;;  %v464_v3 = vld [vmem:[%s650_s1 + $0x20] sm:$0xff]  ;;  %v519_v9 = vmov 8.0   ;;  %s355_s26 = sshll.u32 %s655_s6, 4  ;;  %s356_s26 = int_to_ptr.hbm [resolvable:$true] %s355_s26 }
   0x4   :  { %v463_v4 = vld [vmem:[%s650_s1 + $0x18] sm:$0xff]  ;;  %v462_v5 = vld [vmem:[%s650_s1 + $0x10] sm:$0xff]  ;;  %v461_v6 = vld [vmem:[%s650_s1 + $0x8] sm:$0xff]  ;;  %487 = vrcp.f32 %v519_v9 }
   0x5   :  { %v460_v7 = vld [vmem:[%s650_s1] sm:$0xff]  ;;  %v475_v17 = vld [vmem:[%s651_s2 + $0x38] sm:$0xff]  ;;  %v474_v19 = vld [vmem:[%s651_s2 + $0x30] sm:$0xff] }
   0x6   :  { %92 = vmatpush.bf16.msra.mxu0 %v466_v1  ;;  %v26_v8 = vld [vmem:[%s649_s0] sm:$0xf]  ;;  %214 = vmatpush.bf16.msra.mxu1 %v475_v17  ;;  %v473_v24 = vld [vmem:[%s651_s2 + $0x28] sm:$0xff]  ;;  %v471_v31 = vld [vmem:[%s651_s2 + $0x18] sm:$0xff] }
   0x7   :  { %v472_v28 = vld [vmem:[%s651_s2 + $0x20] sm:$0xff]  ;;  %v470_v34 = vld [vmem:[%s651_s2 + $0x10] sm:$0xff]  ;;  %v469_v37 = vld [vmem:[%s651_s2 + $0x8] sm:$0xff] }
   0x8   :  { %v468_v40 = vld [vmem:[%s651_s2] sm:$0xff]  ;;  %v483_v0 = vld [vmem:[%s652_s3 + $0x38] sm:$0xff] }
   0x9   :  { %v24_v48 = vld [vmem:[%s654_s5] sm:$0x3]  ;;  %334 = vmatpush.bf16.msra.mxu2 %v483_v0 }
   0xa   :  { %93 = vmatpush.bf16.msra.mxu0 %v465_v2  ;;  %v488_v10 = vpop.eup %487  ;;  %215 = vmatpush.bf16.msra.mxu1 %v474_v19  ;;  %v482_v2 = vld [vmem:[%s652_s3 + $0x30] sm:$0xff]  ;;  %v480_v9 = vld [vmem:[%s652_s3 + $0x20] sm:$0xff] }
   0xb   :  { %v111_v11 = vmul.f32 8.0, %v488_v10  ;;  %vm115_vm0 = vweird.f32 %v488_v10 }
   0xd   :  { %v112_v12 = vsub.f32 1.0, %v111_v11  ;;  %335 = vmatpush.bf16.msra.mxu2 %v482_v2 }
   0xe   :  { %94 = vmatpush.bf16.msra.mxu0 %v464_v3  ;;  %216 = vmatpush.bf16.msra.mxu1 %v473_v24 }
   0xf   :  { %v113_v15 = vmul.f32 %v488_v10, %v112_v12  ;;  %v479_v12 = vld [vmem:[%s652_s3 + $0x18] sm:$0xff] }
  0x11   :  { %v114_v20 = vadd.f32 %v488_v10, %v113_v15  ;;  %v478_v15 = vld [vmem:[%s652_s3 + $0x10] sm:$0xff] }
  0x12   :  { %95 = vmatpush.bf16.msra.mxu0 %v463_v4  ;;  %217 = vmatpush.bf16.msra.mxu1 %v472_v28 }
  0x13   :  { %v592_v25 = vsel %vm115_vm0, %v488_v10, %v114_v20 }
  0x16   :  { %96 = vmatpush.bf16.msra.mxu0 %v462_v5  ;;  %218 = vmatpush.bf16.msra.mxu1 %v471_v31 }
  0x1a   :  { %97 = vmatpush.bf16.msra.mxu0 %v461_v6  ;;  %219 = vmatpush.bf16.msra.mxu1 %v470_v34  ;;  %v481_v6 = vld [vmem:[%s652_s3 + $0x28] sm:$0xff] }
  0x1b   :  { %336 = vmatpush.bf16.msra.mxu2 %v481_v6 }
  0x1e   :  { %98 = vmatpush.bf16.msra.mxu0 %v460_v7  ;;  %220 = vmatpush.bf16.msra.mxu1 %v469_v37 }
  0x1f   :  { %337 = vmatpush.bf16.msra.mxu2 %v480_v9 }
  0x21   :  { %99 = vmatmul.bf16.vlgmr.msra.gmra.mxu0 %v26_v8 }
  0x22   :  { %221 = vmatpush.bf16.msra.mxu1 %v468_v40 }
  0x23   :  { %338 = vmatpush.bf16.msra.mxu2 %v479_v12 }
  0x27   :  { %339 = vmatpush.bf16.msra.mxu2 %v478_v15 }
  0x9e   :  { %v100_v13 = vpop.f32.mrf.mxu0 }
  0x9f   :  { %v104_v14 = vrot.slane %v100_v13, 4 }
  0xa1   :  { %v105_v16 = vadd.f32 %v104_v14, %v100_v13 }
  0xa3   :  { %v106_v18 = vrot.slane %v105_v16, 2 }
  0xa5   :  { %v107_v21 = vadd.f32 %v106_v18, %v105_v16  ;;  %v477_v18 = vld [vmem:[%s652_s3 + $0x8] sm:$0xff] }
  0xa6   :  { %v102_v22 = vpop.f32.mrf.mxu0  ;;  %340 = vmatpush.bf16.msra.mxu2 %v477_v18 }
  0xa7   :  { %v108_v23 = vrot.slane %v107_v21, 1 }
  0xa9   :  { %v109_v26 = vadd.f32 %v108_v23, %v107_v21  ;;  %v476_v21 = vld [vmem:[%s652_s3] sm:$0xff] }
  0xaa   :  { %341 = vmatpush.bf16.msra.mxu2 %v476_v21 }
  0xab   :  { %v117_v27 = vmul.f32 %v592_v25, %v109_v26 }
  0xad   :  { %v118_v29 = vsub.f32 %v100_v13, %v117_v27 }
  0xaf   :  { %v119_v30 = vmul.f32 %v118_v29, %v118_v29 }
  0xb1   :  { %v120_v32 = vrot.slane %v119_v30, 4 }
  0xb3   :  { %v121_v33 = vadd.f32 %v120_v32, %v119_v30  ;;  %v25_v30 = vld [vmem:[%s654_s5 + $0x2] sm:$0x3]  ;;  %s520_s5 = smov [#allocation2]  }
  0xb4   :  { %s353_s23 = sshll.u32 %s520_s5, 4  ;;  %s354_s23 = int_to_ptr.vmem [resolvable:$true] %s353_s23 }
  0xb5   :  { %v122_v35 = vrot.slane %v121_v33, 2 }
  0xb7   :  { %v123_v36 = vadd.f32 %v122_v35, %v121_v33 }
  0xb9   :  { %v124_v38 = vrot.slane %v123_v36, 1 }
  0xbb   :  { %v125_v39 = vadd.f32 %v124_v38, %v123_v36 }
  0xbd   :  { %v126_v41 = vmul.f32 %v125_v39, %v592_v25 }
  0xbf   :  { %v127_v42 = vadd.f32 1e-05, %v126_v41 }
  0xc1   :  { %489 = vrsqrt.f32 %v127_v42  ;;  %vm134_vm2 = vweird.f32 %v127_v42 }
  0xc7   :  { %v490_v43 = vpop.eup %489 }
  0xc8   :  { %v129_v44 = vmul.f32 %v490_v43, %v127_v42  ;;  %vm135_vm1 = vweird.f32 %v490_v43  ;;  %v486_v42 = vld [vmem:[%s653_s4] ss:$0 sm:$0xff] }
  0xc9   :  { %vm136_vm3 = vmor %vm134_vm2, %vm135_vm1 }
  0xca   :  { %v130_v45 = vmul.f32 %v490_v43, %v129_v44 }
  0xcc   :  { %v131_v46 = vmul.f32 0.5, %v130_v45 }
  0xce   :  { %v132_v47 = vsub.f32 1.5, %v131_v46 }
  0xd0   :  { %v133_v49 = vmul.f32 %v490_v43, %v132_v47 }
  0xd2   :  { %v137_v50 = vsel %vm136_vm3, %v490_v43, %v133_v49 }
  0xd3   :  { %v138_v51 = vmul.f32 %v137_v50, %v24_v48 }
  0xd5   :  { %v139_v52 = vmul.f32 %v138_v51, %v117_v27  ;;  %v144_v54 = vperm.slane %v138_v51, 0 }
  0xd7   :  { %v141_v53 = vrot.slane %v139_v52, 7  ;;  %v145_v56 = vmul.f32 %v144_v54, %v100_v13 }
  0xd9   :  { %v143_v55 = vsub.f32 %v24_v48, %v141_v53 }
  0xdb   :  { %v146_v57 = vperm.slane %v143_v55, 1 }
  0xdd   :  { %v147_v58 = vadd.f32 %v146_v57, %v145_v56 }
  0xdf   :  { %v148_v59 = vmax.f32 %v147_v58, 0.0 }
  0xe1   :  { %v149_v60 = vpack.c.bf16 %v148_v59, %v148_v59 }
  0xe3   :  { %222 = vmatmul.bf16.vlgmr.msra.gmra.mxu1 %v149_v60 }
 0x160   :  { %v223_v61 = vpop.f32.mrf.mxu1 }
 0x161   :  { %v227_v62 = vrot.slane %v223_v61, 4 }
 0x163   :  { %v228_v63 = vadd.f32 %v227_v62, %v223_v61 }
 0x165   :  { %v229_v1 = vrot.slane %v228_v63, 2 }
 0x167   :  { %v230_v3 = vadd.f32 %v229_v1, %v228_v63 }
 0x168   :  { %v225_v4 = vpop.f32.mrf.mxu1 }
 0x169   :  { %v231_v5 = vrot.slane %v230_v3, 1 }
 0x16b   :  { %v232_v7 = vadd.f32 %v231_v5, %v230_v3 }
 0x16d   :  { %v233_v8 = vmul.f32 %v232_v7, %v592_v25 }
 0x16f   :  { %v234_v10 = vsub.f32 %v223_v61, %v233_v8 }
 0x171   :  { %v235_v11 = vmul.f32 %v234_v10, %v234_v10 }
 0x173   :  { %v236_v13 = vrot.slane %v235_v11, 4 }
 0x175   :  { %v237_v14 = vadd.f32 %v236_v13, %v235_v11 }
 0x177   :  { %v238_v16 = vrot.slane %v237_v14, 2 }
 0x179   :  { %v239_v17 = vadd.f32 %v238_v16, %v237_v14 }
 0x17b   :  { %v240_v19 = vrot.slane %v239_v17, 1 }
 0x17d   :  { %v241_v20 = vadd.f32 %v240_v19, %v239_v17 }
 0x17f   :  { %v242_v22 = vmul.f32 %v241_v20, %v592_v25 }
 0x181   :  { %v243_v23 = vadd.f32 1e-05, %v242_v22 }
 0x183   :  { %491 = vrsqrt.f32 %v243_v23  ;;  %vm250_vm5 = vweird.f32 %v243_v23 }
 0x189   :  { %v492_v24 = vpop.eup %491 }
 0x18a   :  { %v245_v26 = vmul.f32 %v492_v24, %v243_v23  ;;  %vm251_vm4 = vweird.f32 %v492_v24 }
 0x18b   :  { %vm252_vm6 = vmor %vm250_vm5, %vm251_vm4 }
 0x18c   :  { %v246_v27 = vmul.f32 %v492_v24, %v245_v26 }
 0x18e   :  { %v247_v28 = vmul.f32 0.5, %v246_v27 }
 0x190   :  { %v248_v29 = vsub.f32 1.5, %v247_v28 }
 0x192   :  { %v249_v31 = vmul.f32 %v492_v24, %v248_v29 }
 0x194   :  { %v253_v32 = vsel %vm252_vm6, %v492_v24, %v249_v31 }
 0x195   :  { %v254_v33 = vmul.f32 %v253_v32, %v25_v30 }
 0x197   :  { %v255_v34 = vmul.f32 %v254_v33, %v233_v8  ;;  %v260_v35 = vperm.slane %v254_v33, 0 }
 0x199   :  { %v257_v25 = vrot.slane %v255_v34, 7  ;;  %v261_v37 = vmul.f32 %v260_v35, %v223_v61 }
 0x19b   :  { %v259_v36 = vsub.f32 %v25_v30, %v257_v25 }
 0x19d   :  { %v262_v38 = vperm.slane %v259_v36, 1 }
 0x19f   :  { %v263_v39 = vadd.f32 %v262_v38, %v261_v37 }
 0x1a1   :  { %v264_v40 = vmax.f32 %v263_v39, 0.0 }
 0x1a3   :  { %v265_v41 = vpack.c.bf16 %v264_v40, %v264_v40 }
 0x1a5   :  { %342 = vmatmul.bf16.vlgmr.msra.gmra.mxu2 %v265_v41 }
 0x228   :  { %v343_v43 = vpop.f32.mrf.mxu2 }
 0x229   :  { %v344_v44 = vadd.f32 %v486_v42, %v343_v43 }
 0x22b   :  { %347 = vst [vmem:[#allocation2] sm:$0xff] %v344_v44 }
 0x22c   :  { %358 = dma.vmem_to_hbm [thread:$0]  %s354_s23, 128, %s356_s26, [#allocation3]  }
 0x230   :  { %v345_v45 = vpop.f32.mrf.mxu2 }
 0x231   :  { %517 = dma.done.wait [#allocation3], 128  }
 0x232   :  { %518 = vsyncadd [#allocation3], 4294967168 }
 0x233   :  { %363 = vsyncpa [#allocation3], 1 }

</bundles_post_ra>
